<compile_context>
chip_gen: v5e
topology: v5e:2x2
jax: 0.10.0
libtpu: 0.0.40
codegen_flags: <defaults>
</compile_context>

<pallas_src>
import functools

import jax
import jax.numpy as jnp
from jax.experimental import pallas as pl
from jax.experimental.pallas import tpu as pltpu

ALPHA = 1.0          # degrees of freedom of the t-distribution (DEC default)
LANE = 128           # TPU lane width
_PAD_POISON = 1e30   # planted in padded ||c||^2 lanes -> numerator ~ 0


def _reciprocal(x):
    """EUP approx reciprocal + one Newton step (~f32 accurate, off the VALU)."""
    r = pl.reciprocal(x, approx=True)
    return r * (2.0 - x * r)


def dec_kernel(x_ref, w1_ref, b1_ref, w2_ref, b2_ref, ct_ref, csq_ref, out_ref,
               *, alpha):
    """Fused encoder + ClusterAssignment for one batch tile.

    x_ref:   [TB, D_in]    input embeddings (f32 or bf16)
    w1_ref:  [D_in, H1]    encoder layer-1 weight (bf16 or f32)
    b1_ref:  [1, H1]       encoder layer-1 bias (f32)
    w2_ref:  [H1, H]       encoder layer-2 weight (bf16 or f32)
    b2_ref:  [1, H]        encoder layer-2 bias (f32)
    ct_ref:  [H, K_pad]    cluster centers, transposed + lane-padded
    csq_ref: [1, K_pad]    ||c_k||^2; padded lanes hold 1e30 (self-masking)
    out_ref: [TB, K_pad]   soft assignments (padded lanes ~0)
    """
    x = x_ref[...]
    mm_dtype = w1_ref.dtype

    # ---- encoder: Linear -> ReLU -> Linear (MXU matmuls, f32 accumulation) ---
    h = jnp.dot(x.astype(mm_dtype), w1_ref[...],
                preferred_element_type=jnp.float32)
    h = jnp.maximum(h + b1_ref[...], 0.0)
    z = jnp.dot(h.astype(mm_dtype), w2_ref[...],
                preferred_element_type=jnp.float32) + b2_ref[...]

    # ---- squared distances: ||z||^2 + ||c||^2 - 2 z @ c^T --------------------
    z_sq = jnp.sum(z * z, axis=1, keepdims=True)                          # [TB,1]
    cross = jnp.dot(z.astype(ct_ref.dtype), ct_ref[...],
                    preferred_element_type=jnp.float32)                   # [TB,K_pad]
    norm_sq = jnp.maximum(z_sq + csq_ref[...] - 2.0 * cross, 0.0)

    # ---- Student-t kernel.  Padded lanes carry ||c||^2 = 1e30, so their
    #      numerator underflows to ~0; no iota/where mask needed. --------------
    t = 1.0 + norm_sq * (1.0 / alpha)
    power = (alpha + 1.0) / 2.0
    if power == 1.0:
        # DEC default alpha=1: pow is the identity -> pure reciprocal.
        numerator = _reciprocal(t)
    else:
        # General alpha: one exp + one log on the EUP instead of a full pow.
        numerator = jnp.exp(-power * jnp.log(t))

    denom = jnp.sum(numerator, axis=1, keepdims=True)
    out_ref[...] = (numerator * _reciprocal(denom)).astype(out_ref.dtype)


def _pick_tile_b(batch, *, target=1024):
    """Batch-tile size.

    Small batches (<= target): a single grid step -- weights are resident, so
    extra steps only add ~0.35 us fixed overhead each and shrink the MXU M fill.
    Large batches: largest divisor of `batch` that is <= target and a multiple
    of 256 (MXU M on v6e/v7x; also 128-aligned for v5e), falling back to 128
    then 8, preferring an even number of grid steps (v7x has 2 TensorCores).
    """
    if batch <= target:
        return batch
    for align in (256, 128, 8):
        divs = [t for t in range(align, target + 1, align) if batch % t == 0]
        if not divs:
            continue
        even = [t for t in divs if (batch // t) % 2 == 0]
        return max(even) if even else max(divs)
    return batch


def _device_vmem_cap():
    """Physical per-core VMEM, with a conservative fallback (v7x = 64 MiB)."""
    try:
        cap = getattr(pltpu.get_tpu_info(), "vmem_capacity_bytes", None)
        if cap:
            return int(cap)
    except Exception:
        pass
    return 64 << 20


def dec_forward(x, w1, b1, w2, b2, centers, *, alpha=ALPHA, tile_b=None,
                matmul_dtype=jnp.bfloat16, cross_dtype=jnp.float32,
                out_dtype=jnp.float32, resident_buffer_count=1,
                return_padded=False):
    """Fused DEC forward.

    Returns q with rows summing to 1: [B, K] by default, or the lane-padded
    [B, K_pad] slab when `return_padded=True` (lets downstream ops fuse the
    slice instead of paying a standalone HBM pass).

    Note: `matmul_dtype=bf16` (default) feeds the encoder matmuls in bf16 with
    f32 accumulation; pass `matmul_dtype=jnp.float32` for exact PyTorch parity.
    """
    B, D_in = x.shape
    H1 = w1.shape[1]
    H = w2.shape[1]
    K = centers.shape[0]

    if tile_b is None:
        tile_b = _pick_tile_b(B)
    assert B % tile_b == 0, (B, tile_b)

    # Lane-dense cluster dimension.
    K_pad = max(LANE, ((K + LANE - 1) // LANE) * LANE)

    # Wrapper-side layout plumbing (free): compact-dtype weights, padded +
    # transposed centers, precomputed ||c||^2 with poisoned padding lanes.
    w1c = w1.astype(matmul_dtype)
    w2c = w2.astype(matmul_dtype)
    b1c = b1.reshape(1, H1).astype(jnp.float32)
    b2c = b2.reshape(1, H).astype(jnp.float32)
    c = centers.astype(jnp.float32)
    c_t = jnp.zeros((H, K_pad), jnp.float32).at[:, :K].set(c.T).astype(cross_dtype)
    c_sq = jnp.full((1, K_pad), _PAD_POISON, jnp.float32).at[:, :K].set(
        jnp.sum(c * c, axis=1)[None, :])

    grid = (B // tile_b,)
    kernel = functools.partial(dec_kernel, alpha=float(alpha))

    def const_spec(shape):
        # Resident operands (block index never changes): single-buffer them by
        # default -- double-buffering buys zero overlap and only burns VMEM.
        if resident_buffer_count is None:
            return pl.BlockSpec(shape, lambda i: (0, 0))
        return pl.BlockSpec(shape, lambda i: (0, 0),
                            pipeline_mode=pl.Buffered(
                                buffer_count=int(resident_buffer_count)))

    # VMEM budget: actual tile footprint + fixed headroom, capped at physical
    # VMEM minus compiler headroom (v7x is only 64 MiB per TensorCore).
    x_bytes = jnp.dtype(x.dtype).itemsize
    w_bytes = jnp.dtype(matmul_dtype).itemsize
    c_bytes = jnp.dtype(cross_dtype).itemsize
    o_bytes = jnp.dtype(out_dtype).itemsize
    n_res = 2 if resident_buffer_count is None else int(resident_buffer_count)
    est = (2 * tile_b * D_in * x_bytes                     # double-buffered x tile
           + 2 * tile_b * K_pad * o_bytes                  # double-buffered out tile
           + n_res * ((D_in * H1 + H1 * H) * w_bytes       # weights
                      + (H1 + H) * 4                       # biases
                      + H * K_pad * c_bytes                # centers^T (padded)
                      + K_pad * 4)                         # ||c||^2 (padded)
           + 4 * tile_b * (H1 + H + K_pad) * 4)            # live intermediates
    vmem_cap = _device_vmem_cap() - (8 << 20)
    vmem_limit = int(min(max(32 << 20, est + (16 << 20)), vmem_cap))

    q_pad = pl.pallas_call(
        kernel,
        out_shape=jax.ShapeDtypeStruct((B, K_pad), out_dtype),
        grid_spec=pltpu.PrefetchScalarGridSpec(
            num_scalar_prefetch=0,
            grid=grid,
            in_specs=[
                pl.BlockSpec((tile_b, D_in), lambda i: (i, 0)),  # x: batch-tiled
                const_spec((D_in, H1)),                          # w1
                const_spec((1, H1)),                             # b1
                const_spec((H1, H)),                             # w2
                const_spec((1, H)),                              # b2
                const_spec((H, K_pad)),                          # centers^T (padded)
                const_spec((1, K_pad)),                          # ||c||^2 (padded)
            ],
            out_specs=pl.BlockSpec((tile_b, K_pad), lambda i: (i, 0)),
        ),
        compiler_params=pltpu.CompilerParams(
            dimension_semantics=("parallel",),
            vmem_limit_bytes=vmem_limit),
    )(x, w1c, b1c, w2c, b2c, c_t, c_sq)

    if return_padded:
        return q_pad
    return q_pad[:, :K]


def _xavier_uniform(key, shape):
    fan_in, fan_out = shape[0], shape[1]
    limit = jnp.sqrt(6.0 / (fan_in + fan_out))
    return jax.random.uniform(key, shape, jnp.float32, -limit, limit)


if __name__ == "__main__":
    # Small, deterministic synthetic setup.
    # batch, embedding, enc-hidden, hidden_dimension, cluster_number
    B, D_IN, H1, H, K = 64, 32, 64, 16, 10

    key = jax.random.PRNGKey(0)
    kx, kw1, kw2, kc = jax.random.split(key, 4)

    x = jax.random.normal(kx, (B, D_IN), jnp.float32)

    # Deterministic parameter init (encoder weights + xavier-uniform cluster
    # centers, matching ClusterAssignment's nn.init.xavier_uniform_ default).
    w1 = _xavier_uniform(kw1, (D_IN, H1))
    b1 = jnp.zeros((1, H1), jnp.float32)
    w2 = _xavier_uniform(kw2, (H1, H))
    b2 = jnp.zeros((1, H), jnp.float32)
    centers = _xavier_uniform(kc, (K, H))

    # Default path: f32 output, [B, K] result (module semantics).
    q = dec_forward(x, w1, b1, w2, b2, centers, alpha=ALPHA)
    q = jax.block_until_ready(q)

    # Reference 1: same bf16-input / f32-accumulation matmul convention as the
    # kernel (tight tolerance).
    mm = jnp.bfloat16
    h_ref = jnp.dot(x.astype(mm), w1.astype(mm),
                    preferred_element_type=jnp.float32)
    h_ref = jnp.maximum(h_ref + b1, 0.0)
    z_ref = jnp.dot(h_ref.astype(mm), w2.astype(mm),
                    preferred_element_type=jnp.float32) + b2
    norm_sq = jnp.sum((z_ref[:, None, :] - centers[None, :, :]) ** 2, axis=2)
    num = (1.0 / (1.0 + norm_sq / ALPHA)) ** ((ALPHA + 1.0) / 2.0)
    ref = num / jnp.sum(num, axis=1, keepdims=True)

    # Reference 2: pure f32 == exact PyTorch module semantics (loose tolerance
    # since the kernel feeds the encoder matmuls in bf16).
    h32 = jnp.maximum(x @ w1 + b1, 0.0)
    z32 = h32 @ w2 + b2
    ns32 = jnp.sum((z32[:, None, :] - centers[None, :, :]) ** 2, axis=2)
    num32 = (1.0 / (1.0 + ns32 / ALPHA)) ** ((ALPHA + 1.0) / 2.0)
    ref32 = num32 / jnp.sum(num32, axis=1, keepdims=True)

    assert q.shape == (B, K)
    assert bool(jnp.all(jnp.isfinite(q))), "non-finite output"
    assert jnp.allclose(jnp.sum(q, axis=1), 1.0, atol=1e-4), "rows don't sum to 1"
    assert jnp.allclose(q, ref, atol=1e-4, rtol=1e-4), "mismatch vs bf16-conv reference"
    assert jnp.allclose(q, ref32, atol=2e-2, rtol=2e-2), "mismatch vs f32 reference"

    # Bandwidth-lean path: bf16 output + padded return (no post-kernel slice).
    q_bf = dec_forward(x, w1, b1, w2, b2, centers, alpha=ALPHA,
                       out_dtype=jnp.bfloat16, return_padded=True)
    q_bf = jax.block_until_ready(q_bf)
    assert q_bf.shape[0] == B and q_bf.shape[1] % LANE == 0
    assert bool(jnp.all(jnp.isfinite(q_bf)))
    assert jnp.allclose(q_bf[:, :K].astype(jnp.float32), ref,
                        atol=1e-2, rtol=2e-2), "bf16 output path mismatch"

    print("KERNEL_OK")
</pallas_src>

<mosaic_0001>
module attributes {stable_mosaic.version = 11 : i64} {
  func.func @dec_kernel(%arg0: i32, %arg1: memref<64x32xf32, #tpu.memory_space<vmem>>, %arg2: memref<32x64xbf16, #tpu.memory_space<vmem>>, %arg3: memref<1x64xf32, #tpu.memory_space<vmem>>, %arg4: memref<64x16xbf16, #tpu.memory_space<vmem>>, %arg5: memref<1x16xf32, #tpu.memory_space<vmem>>, %arg6: memref<16x128xf32, #tpu.memory_space<vmem>>, %arg7: memref<1x128xf32, #tpu.memory_space<vmem>>, %arg8: memref<64x128xf32, #tpu.memory_space<vmem>>) attributes {dimension_semantics = [#tpu.dimension_semantics<parallel>], iteration_bounds = array<i64: 1>, scalar_prefetch = 0 : i64, scratch_operands = 0 : i64, tpu.core_type = #tpu.core_type<tc>, window_params = [{transform_indices = @transform_0, window_bounds = array<i64: 64, 32>}, {pipeline_mode = #tpu.pipeline_mode<synchronous>, transform_indices = @transform_1, window_bounds = array<i64: 32, 64>}, {pipeline_mode = #tpu.pipeline_mode<synchronous>, transform_indices = @transform_2, window_bounds = array<i64: 1, 64>}, {pipeline_mode = #tpu.pipeline_mode<synchronous>, transform_indices = @transform_3, window_bounds = array<i64: 64, 16>}, {pipeline_mode = #tpu.pipeline_mode<synchronous>, transform_indices = @transform_4, window_bounds = array<i64: 1, 16>}, {pipeline_mode = #tpu.pipeline_mode<synchronous>, transform_indices = @transform_5, window_bounds = array<i64: 16, 128>}, {pipeline_mode = #tpu.pipeline_mode<synchronous>, transform_indices = @transform_6, window_bounds = array<i64: 1, 128>}, {transform_indices = @transform_7, window_bounds = array<i64: 64, 128>}]} {
    %c0 = arith.constant 0 : index
    %c0_0 = arith.constant 0 : index
    %0 = vector.load %arg1[%c0, %c0_0] : memref<64x32xf32, #tpu.memory_space<vmem>>, vector<64x32xf32>
    %1 = arith.truncf %0 : vector<64x32xf32> to vector<64x32xbf16>
    %c0_1 = arith.constant 0 : index
    %c0_2 = arith.constant 0 : index
    %2 = vector.load %arg2[%c0_1, %c0_2] : memref<32x64xbf16, #tpu.memory_space<vmem>>, vector<32x64xbf16>
    %cst = arith.constant dense<0.000000e+00> : vector<64x64xf32>
    %3 = tpu.matmul %1, %2, %cst {dimension_numbers = #tpu.dot_dimension_numbers<[1], [0], [0], [1], [0, 0, 1, 1], [], []>} : vector<64x32xbf16>, vector<32x64xbf16>, vector<64x64xf32> -> vector<64x64xf32>
    %c0_3 = arith.constant 0 : index
    %c0_4 = arith.constant 0 : index
    %4 = vector.load %arg3[%c0_3, %c0_4] : memref<1x64xf32, #tpu.memory_space<vmem>>, vector<1x64xf32>
    %5 = vector.broadcast %4 : vector<1x64xf32> to vector<64x64xf32>
    %6 = arith.addf %3, %5 : vector<64x64xf32>
    %cst_5 = arith.constant 0.000000e+00 : f32
    %7 = vector.broadcast %cst_5 : f32 to vector<64x64xf32>
    %8 = arith.maximumf %6, %7 : vector<64x64xf32>
    %9 = arith.truncf %8 : vector<64x64xf32> to vector<64x64xbf16>
    %c0_6 = arith.constant 0 : index
    %c0_7 = arith.constant 0 : index
    %10 = vector.load %arg4[%c0_6, %c0_7] : memref<64x16xbf16, #tpu.memory_space<vmem>>, vector<64x16xbf16>
    %cst_8 = arith.constant dense<0.000000e+00> : vector<64x16xf32>
    %11 = tpu.matmul %9, %10, %cst_8 {dimension_numbers = #tpu.dot_dimension_numbers<[1], [0], [0], [1], [0, 0, 1, 1], [], []>} : vector<64x64xbf16>, vector<64x16xbf16>, vector<64x16xf32> -> vector<64x16xf32>
    %c0_9 = arith.constant 0 : index
    %c0_10 = arith.constant 0 : index
    %12 = vector.load %arg5[%c0_9, %c0_10] : memref<1x16xf32, #tpu.memory_space<vmem>>, vector<1x16xf32>
    %13 = vector.broadcast %12 : vector<1x16xf32> to vector<64x16xf32>
    %14 = arith.addf %11, %13 : vector<64x16xf32>
    %15 = arith.mulf %14, %14 : vector<64x16xf32>
    %cst_11 = arith.constant dense<0.000000e+00> : vector<64xf32>
    %16 = vector.multi_reduction <add>, %15, %cst_11 [1] : vector<64x16xf32> to vector<64xf32>
    %17 = vector.shape_cast %16 : vector<64xf32> to vector<64x1xf32>
    %c0_12 = arith.constant 0 : index
    %c0_13 = arith.constant 0 : index
    %18 = vector.load %arg6[%c0_12, %c0_13] : memref<16x128xf32, #tpu.memory_space<vmem>>, vector<16x128xf32>
    %cst_14 = arith.constant dense<0.000000e+00> : vector<64x128xf32>
    %19 = tpu.matmul %14, %18, %cst_14 {dimension_numbers = #tpu.dot_dimension_numbers<[1], [0], [0], [1], [0, 0, 1, 1], [], []>} : vector<64x16xf32>, vector<16x128xf32>, vector<64x128xf32> -> vector<64x128xf32>
    %c0_15 = arith.constant 0 : index
    %c0_16 = arith.constant 0 : index
    %20 = vector.load %arg7[%c0_15, %c0_16] : memref<1x128xf32, #tpu.memory_space<vmem>>, vector<1x128xf32>
    %21 = vector.broadcast %17 : vector<64x1xf32> to vector<64x128xf32>
    %22 = vector.broadcast %20 : vector<1x128xf32> to vector<64x128xf32>
    %23 = arith.addf %21, %22 : vector<64x128xf32>
    %cst_17 = arith.constant 2.000000e+00 : f32
    %24 = vector.broadcast %cst_17 : f32 to vector<64x128xf32>
    %25 = arith.mulf %24, %19 : vector<64x128xf32>
    %26 = arith.subf %23, %25 : vector<64x128xf32>
    %cst_18 = arith.constant 0.000000e+00 : f32
    %27 = vector.broadcast %cst_18 : f32 to vector<64x128xf32>
    %28 = arith.maximumf %26, %27 : vector<64x128xf32>
    %cst_19 = arith.constant 1.000000e+00 : f32
    %29 = vector.broadcast %cst_19 : f32 to vector<64x128xf32>
    %30 = arith.mulf %28, %29 : vector<64x128xf32>
    %cst_20 = arith.constant 1.000000e+00 : f32
    %31 = vector.broadcast %cst_20 : f32 to vector<64x128xf32>
    %32 = arith.addf %31, %30 : vector<64x128xf32>
    %33 = tpu.reciprocal %32 {approx = true} : vector<64x128xf32> -> vector<64x128xf32>
    %34 = arith.mulf %32, %33 : vector<64x128xf32>
    %cst_21 = arith.constant 2.000000e+00 : f32
    %35 = vector.broadcast %cst_21 : f32 to vector<64x128xf32>
    %36 = arith.subf %35, %34 : vector<64x128xf32>
    %37 = arith.mulf %33, %36 : vector<64x128xf32>
    %cst_22 = arith.constant dense<0.000000e+00> : vector<64xf32>
    %38 = vector.multi_reduction <add>, %37, %cst_22 [1] : vector<64x128xf32> to vector<64xf32>
    %39 = vector.shape_cast %38 : vector<64xf32> to vector<64x1xf32>
    %40 = tpu.reciprocal %39 {approx = true} : vector<64x1xf32> -> vector<64x1xf32>
    %41 = arith.mulf %39, %40 : vector<64x1xf32>
    %cst_23 = arith.constant 2.000000e+00 : f32
    %42 = vector.broadcast %cst_23 : f32 to vector<64x1xf32>
    %43 = arith.subf %42, %41 : vector<64x1xf32>
    %44 = arith.mulf %40, %43 : vector<64x1xf32>
    %45 = vector.broadcast %44 : vector<64x1xf32> to vector<64x128xf32>
    %46 = arith.mulf %37, %45 : vector<64x128xf32>
    %c0_24 = arith.constant 0 : index
    %c0_25 = arith.constant 0 : index
    %47 = vector.load %arg8[%c0_24, %c0_25] : memref<64x128xf32, #tpu.memory_space<vmem>>, vector<64x128xf32>
    tpu.vector_store %arg8[%c0_24, %c0_25], %46 {strides = array<i32>} : memref<64x128xf32, #tpu.memory_space<vmem>>, vector<64x128xf32>,
    return
  }
  func.func @transform_0(%arg0: i32) -> (i32, i32) {
    %c0_i32 = arith.constant 0 : i32
    %c0_i32_0 = arith.constant 0 : i32
    return %arg0, %c0_i32 : i32, i32
  }
  func.func @transform_1(%arg0: i32) -> (i32, i32) {
    %c0_i32 = arith.constant 0 : i32
    %c0_i32_0 = arith.constant 0 : i32
    %c0_i32_1 = arith.constant 0 : i32
    return %c0_i32, %c0_i32_0 : i32, i32
  }
  func.func @transform_2(%arg0: i32) -> (i32, i32) {
    %c0_i32 = arith.constant 0 : i32
    %c0_i32_0 = arith.constant 0 : i32
    %c0_i32_1 = arith.constant 0 : i32
    return %c0_i32, %c0_i32_0 : i32, i32
  }
  func.func @transform_3(%arg0: i32) -> (i32, i32) {
    %c0_i32 = arith.constant 0 : i32
    %c0_i32_0 = arith.constant 0 : i32
    %c0_i32_1 = arith.constant 0 : i32
    return %c0_i32, %c0_i32_0 : i32, i32
  }
  func.func @transform_4(%arg0: i32) -> (i32, i32) {
    %c0_i32 = arith.constant 0 : i32
    %c0_i32_0 = arith.constant 0 : i32
    %c0_i32_1 = arith.constant 0 : i32
    return %c0_i32, %c0_i32_0 : i32, i32
  }
  func.func @transform_5(%arg0: i32) -> (i32, i32) {
    %c0_i32 = arith.constant 0 : i32
    %c0_i32_0 = arith.constant 0 : i32
    %c0_i32_1 = arith.constant 0 : i32
    return %c0_i32, %c0_i32_0 : i32, i32
  }
  func.func @transform_6(%arg0: i32) -> (i32, i32) {
    %c0_i32 = arith.constant 0 : i32
    %c0_i32_0 = arith.constant 0 : i32
    %c0_i32_1 = arith.constant 0 : i32
    return %c0_i32, %c0_i32_0 : i32, i32
  }
  func.func @transform_7(%arg0: i32) -> (i32, i32) {
    %c0_i32 = arith.constant 0 : i32
    %c0_i32_0 = arith.constant 0 : i32
    return %arg0, %c0_i32 : i32, i32
  }
}

</mosaic_0001>

<bundles_post_ra>
// kernel: tpu_custom_call.1
= control target key start
LH: loop header
LB: loop body
LE: loop exit
PB: predicated region body
PF: predicated region fallthrough
CT: control target
= control target key end

     0   :  { %s729_s0 = inlined_call_operand.vmem [shape: f32[64,32], index: 0, kind: input, shape index: {}]   ;;  %s730_s1 = inlined_call_operand.vmem [shape: bf16[32,64], index: 1, kind: input, shape index: {}]   ;;  %s731_s2 = inlined_call_operand.vmem [shape: f32[1,64], index: 2, kind: input, shape index: {}]   ;;  %s732_s3 = inlined_call_operand.vmem [shape: bf16[64,16], index: 3, kind: input, shape index: {}]   ;;  %s733_s4 = inlined_call_operand.vmem [shape: f32[1,16], index: 4, kind: input, shape index: {}]   ;;  %s734_s5 = inlined_call_operand.vmem [shape: f32[16,128], index: 5, kind: input, shape index: {}]   ;;  %s735_s6 = inlined_call_operand.vmem [shape: f32[1,128], index: 6, kind: input, shape index: {}]   ;;  %s736_s7 = inlined_call_operand.hbm [shape: f32[64,128], index: 7, kind: output, shape index: {}]  }
   0x1   :  { %v491_v0 = vld [vmem:[%s730_s1 + $0x8] sm:$0xff]  ;;  %v490_v1 = vld [vmem:[%s730_s1] sm:$0xff] }
   0x2   :  { %79 = vmatpush.bf16.msra.mxu0 %v491_v0  ;;  %v28_v2 = vld [vmem:[%s729_s0] sm:$0xff]  ;;  %v29_v3 = vld [vmem:[%s729_s0 + $0x8] sm:$0xff] }
   0x3   :  { %12 = vsyncpa [#allocation3], 0  ;;  %v36_v4 = vpack.c.bf16 %v29_v3, %v28_v2  ;;  %vm60_vm0 = vcmask 261120   ;;  %v30_v5 = vld [vmem:[%s729_s0 + $0x10] sm:$0xff]  ;;  %v31_v6 = vld [vmem:[%s729_s0 + $0x18] sm:$0xff]  ;;  %vm150_vm1 = vcmask 523264  }
   0x4   :  { %v37_v7 = vpack.c.bf16 %v31_v6, %v30_v5  ;;  %v32_v8 = vld [vmem:[%s729_s0 + $0x20] sm:$0xff]  ;;  %v33_v9 = vld [vmem:[%s729_s0 + $0x28] sm:$0xff]  ;;  %v34_v11 = vld [vmem:[%s729_s0 + $0x30] sm:$0xff]  ;;  %vm200_vm2 = vcmask 130048   ;;  %s438_s12 = sshll.u32 %s736_s7, 4  ;;  %s565_s13 = smov 128   ;;  %s439_s12 = int_to_ptr.hbm [resolvable:$true] %s438_s12 }
   0x5   :  { %v38_v10 = vpack.c.bf16 %v33_v9, %v32_v8  ;;  %v35_v12 = vld [vmem:[%s729_s0 + $0x38] sm:$0xff]  ;;  %v494_v15 = vld [vmem:[%s732_s3 + $0x10] sm:$0xff]  ;;  %v493_v16 = vld [vmem:[%s732_s3 + $0x8] sm:$0xff]  ;;  %s566_s14 = smov 8  }
   0x6   :  { %80 = vmatpush.bf16.msra.mxu0 %v490_v1  ;;  %v39_v13 = vpack.c.bf16 %v35_v12, %v34_v11  ;;  %v495_v14 = vld [vmem:[%s732_s3 + $0x18] sm:$0xff]  ;;  %v492_v17 = vld [vmem:[%s732_s3] sm:$0xff]  ;;  %v226_v47 = vld [vmem:[%s734_s5 + $0x8] sm:$0xff] }
   0x7   :  { %167 = vmatpush.bf16.msra.mxu1 %v495_v14  ;;  %496 = vmatpush.bf16.msra.mxu3 %v495_v14  ;;  %v503_v19 = vld [vmem:[%s731_s2] ss:$0 sm:$0xff] }
   0x8   :  { %265 = vmatpush.msra.mxu2 %v226_v47  ;;  %v225_v48 = vld [vmem:[%s734_s5] sm:$0xff] }
   0x9   :  { %458 = vmatmul.msk.bf16.vlgmr.msra.gmra.mxu0 %vm60_vm0, %v36_v4  ;;  %v504_v49 = vld [vmem:[%s733_s4] ss:$0 sm:$0xff] }
   0xa   :  { %266 = vmatpush.msra.mxu2 %v225_v48 }
   0xb   :  { %168 = vmatpush.bf16.msra.mxu1 %v494_v15  ;;  %497 = vmatpush.bf16.msra.mxu3 %v494_v15 }
   0xf   :  { %169 = vmatpush.bf16.msra.mxu1 %v493_v16  ;;  %498 = vmatpush.bf16.msra.mxu3 %v493_v16 }
  0x13   :  { %170 = vmatpush.bf16.msra.mxu1 %v492_v17  ;;  %499 = vmatpush.bf16.msra.mxu3 %v492_v17 }
  0x19   :  { %459 = vmatmul.msk.bf16.gmra.mxu0 %vm60_vm0, %v37_v7 }
  0x29   :  { %460 = vmatmul.msk.bf16.gmra.mxu0 %vm60_vm0, %v38_v10 }
  0x39   :  { %461 = vmatmul.msk.bf16.gmra.mxu0 %vm60_vm0, %v39_v13 }
  0x86   :  { %v82_v18 = vpop.f32.mrf.mxu0 }
  0x87   :  { %v83_v20 = vadd.f32 %v503_v19, %v82_v18 }
  0x89   :  { %v102_v23 = vmax.f32 %v83_v20, 0.0 }
  0x8e   :  { %v84_v21 = vpop.f32.mrf.mxu0 }
  0x8f   :  { %v85_v22 = vadd.f32 %v503_v19, %v84_v21 }
  0x91   :  { %v103_v24 = vmax.f32 %v85_v22, 0.0 }
  0x93   :  { %v110_v25 = vpack.c.bf16 %v103_v24, %v102_v23 }
  0x95   :  { %478 = vmatmul.msk.bf16.vlgmr.msra.gmra.mxu1 %vm150_vm1, %v110_v25 }
  0x96   :  { %v87_v26 = vpop.f32.mrf.mxu0 }
  0x97   :  { %v88_v27 = vadd.f32 %v503_v19, %v87_v26 }
  0x99   :  { %v104_v30 = vmax.f32 %v88_v27, 0.0 }
  0x9e   :  { %v89_v28 = vpop.f32.mrf.mxu0 }
  0x9f   :  { %v90_v29 = vadd.f32 %v503_v19, %v89_v28 }
  0xa1   :  { %v105_v31 = vmax.f32 %v90_v29, 0.0 }
  0xa3   :  { %v111_v32 = vpack.c.bf16 %v105_v31, %v104_v30 }
  0xa5   :  { %479 = vmatmul.msk.bf16.vlgmr.msra.gmra.mxu3 %vm150_vm1, %v111_v32 }
  0xa6   :  { %v92_v33 = vpop.f32.mrf.mxu0 }
  0xa7   :  { %v93_v34 = vadd.f32 %v503_v19, %v92_v33 }
  0xa9   :  { %v106_v37 = vmax.f32 %v93_v34, 0.0 }
  0xae   :  { %v94_v35 = vpop.f32.mrf.mxu0 }
  0xaf   :  { %v95_v36 = vadd.f32 %v503_v19, %v94_v35 }
  0xb1   :  { %v107_v38 = vmax.f32 %v95_v36, 0.0 }
  0xb3   :  { %v112_v39 = vpack.c.bf16 %v107_v38, %v106_v37 }
  0xb5   :  { %480 = vmatmul.msk.bf16.gmra.mxu3 %vm150_vm1, %v112_v39 }
  0xb6   :  { %v97_v40 = vpop.f32.mrf.mxu0 }
  0xb7   :  { %v98_v41 = vadd.f32 %v503_v19, %v97_v40 }
  0xb9   :  { %v108_v44 = vmax.f32 %v98_v41, 0.0 }
  0xbe   :  { %v99_v42 = vpop.f32.mrf.mxu0 }
  0xbf   :  { %v100_v43 = vadd.f32 %v503_v19, %v99_v42  ;;  %v684_v19 = vld [vmem:[%s735_s6] ss:$0 sm:$0xff]  ;;  %s564_s6 = smov [#allocation2]  }
  0xc0   :  { %s436_s10 = sshll.u32 %s564_s6, 4  ;;  %s437_s10 = int_to_ptr.vmem [resolvable:$true] %s436_s10 }
  0xc1   :  { %v109_v45 = vmax.f32 %v100_v43, 0.0 }
  0xc3   :  { %v113_v46 = vpack.c.bf16 %v109_v45, %v108_v44 }
  0xc5   :  { %481 = vmatmul.msk.bf16.gmra.mxu3 %vm150_vm1, %v113_v46 }
 0x112   :  { %v172_v50 = vpop.f32.mrf.mxu1 }
 0x113   :  { %v173_v51 = vadd.f32 %v504_v49, %v172_v50 }
 0x115   :  { %482 = vmatmul.msk.f32.vlgmr.msra.gmra.mxu2 %vm200_vm2, %v173_v51  ;;  %v192_v52 = vmul.f32 %v173_v51, %v173_v51 }
 0x117   :  { %v201_v53 = vsel %vm200_vm2, %v192_v52, 0.0 }
 0x118   :  { %202 = vadd.xlane.f32.xlu0 %v201_v53 }
 0x11a   :  { %v174_v54 = vpop.f32.mrf.mxu1 }
 0x11b   :  { %v175_v55 = vadd.f32 %v504_v49, %v174_v54 }
 0x11d   :  { %483 = vmatmul.msk.f32.gmra.mxu2 %vm200_vm2, %v175_v55  ;;  %v193_v56 = vmul.f32 %v175_v55, %v175_v55 }
 0x11f   :  { %v204_v57 = vsel %vm200_vm2, %v193_v56, 0.0 }
 0x120   :  { %205 = vadd.xlane.f32.xlu0 %v204_v57 }
 0x128   :  { %v177_v58 = vpop.f32.mrf.mxu3 }
 0x129   :  { %v178_v59 = vadd.f32 %v504_v49, %v177_v58 }
 0x12b   :  { %484 = vmatmul.msk.f32.gmra.mxu2 %vm200_vm2, %v178_v59  ;;  %v194_v60 = vmul.f32 %v178_v59, %v178_v59 }
 0x12d   :  { %v207_v61 = vsel %vm200_vm2, %v194_v60, 0.0 }
 0x12e   :  { %208 = vadd.xlane.f32.xlu1 %v207_v61 }
 0x130   :  { %v179_v62 = vpop.f32.mrf.mxu3 }
 0x131   :  { %v180_v63 = vadd.f32 %v504_v49, %v179_v62 }
 0x133   :  { %485 = vmatmul.msk.f32.gmra.mxu2 %vm200_vm2, %v180_v63  ;;  %v195_v0 = vmul.f32 %v180_v63, %v180_v63 }
 0x135   :  { %v210_v1 = vsel %vm200_vm2, %v195_v0, 0.0 }
 0x136   :  { %211 = vadd.xlane.f32.xlu1 %v210_v1 }
 0x138   :  { %v182_v2 = vpop.f32.mrf.mxu3 }
 0x139   :  { %v183_v3 = vadd.f32 %v504_v49, %v182_v2 }
 0x13b   :  { %486 = vmatmul.msk.f32.gmra.mxu2 %vm200_vm2, %v183_v3  ;;  %v196_v4 = vmul.f32 %v183_v3, %v183_v3 }
 0x13d   :  { %v213_v5 = vsel %vm200_vm2, %v196_v4, 0.0 }
 0x13e   :  { %214 = vadd.xlane.f32.xlu2 %v213_v5 }
 0x140   :  { %v184_v6 = vpop.f32.mrf.mxu3 }
 0x141   :  { %v185_v7 = vadd.f32 %v504_v49, %v184_v6 }
 0x143   :  { %487 = vmatmul.msk.f32.gmra.mxu2 %vm200_vm2, %v185_v7  ;;  %v197_v8 = vmul.f32 %v185_v7, %v185_v7 }
 0x145   :  { %v216_v9 = vsel %vm200_vm2, %v197_v8, 0.0 }
 0x146   :  { %217 = vadd.xlane.f32.xlu2 %v216_v9 }
 0x148   :  { %v187_v10 = vpop.f32.mrf.mxu3 }
 0x149   :  { %v188_v11 = vadd.f32 %v504_v49, %v187_v10 }
 0x14b   :  { %488 = vmatmul.msk.f32.gmra.mxu2 %vm200_vm2, %v188_v11  ;;  %v198_v12 = vmul.f32 %v188_v11, %v188_v11 }
 0x14d   :  { %v219_v13 = vsel %vm200_vm2, %v198_v12, 0.0 }
 0x14e   :  { %220 = vadd.xlane.f32.xlu0 %v219_v13 }
 0x150   :  { %v189_v14 = vpop.f32.mrf.mxu3 }
 0x151   :  { %v190_v15 = vadd.f32 %v504_v49, %v189_v14 }
 0x153   :  { %489 = vmatmul.msk.f32.gmra.mxu2 %vm200_vm2, %v190_v15  ;;  %v199_v16 = vmul.f32 %v190_v15, %v190_v15 }
 0x155   :  { %v222_v17 = vsel %vm200_vm2, %v199_v16, 0.0 }
 0x156   :  { %223 = vadd.xlane.f32.xlu1 %v222_v17 }
 0x18b   :  { %v203_v18 = vpop.xlane.xlu0 %202 }
 0x18c   :  { %v296_v21 = vadd.f32 %v684_v19, %v203_v18 }
 0x193   :  { %v206_v25 = vpop.xlane.xlu0 %205 }
 0x194   :  { %v297_v28 = vadd.f32 %v684_v19, %v206_v25 }
 0x198   :  { %v268_v20 = vpop.f32.mrf.mxu2 }
 0x199   :  { %v304_v22 = vmul.f32 2.0, %v268_v20 }
 0x19b   :  { %v312_v23 = vsub.f32 %v296_v21, %v304_v22 }
 0x19d   :  { %v320_v24 = vmax.f32 %v312_v23, 0.0 }
 0x19f   :  { %v328_v26 = vadd.f32 1.0, %v320_v24 }
 0x1a0   :  { %v271_v27 = vpop.f32.mrf.mxu2 }
 0x1a1   :  { %506 = vrcp.f32 %v328_v26  ;;  %v305_v29 = vmul.f32 2.0, %v271_v27  ;;  %v209_v35 = vpop.xlane.xlu1 %208 }
 0x1a2   :  { %v298_v40 = vadd.f32 %v684_v19, %v209_v35 }
 0x1a3   :  { %v313_v30 = vsub.f32 %v297_v28, %v305_v29 }
 0x1a5   :  { %v321_v31 = vmax.f32 %v313_v30, 0.0 }
 0x1a7   :  { %v507_v32 = vpop.eup %506  ;;  %v329_v33 = vadd.f32 1.0, %v321_v31 }
 0x1a8   :  { %v344_v34 = vmul.f32 %v507_v32, %v328_v26 }
 0x1a9   :  { %508 = vrcp.f32 %v329_v33  ;;  %v212_v46 = vpop.xlane.xlu1 %211 }
 0x1aa   :  { %v352_v36 = vsub.f32 2.0, %v344_v34  ;;  %v299_v50 = vadd.f32 %v684_v19, %v212_v46 }
 0x1ac   :  { %v688_v37 = vmul.f32 %v507_v32, %v352_v36 }
 0x1ae   :  { %v274_v38 = vpop.f32.mrf.mxu2  ;;  %368 = vadd.xlane.f32.xlu2 %v688_v37 }
 0x1af   :  { %v509_v39 = vpop.eup %508  ;;  %v306_v41 = vmul.f32 2.0, %v274_v38 }
 0x1b0   :  { %v345_v42 = vmul.f32 %v509_v39, %v329_v33 }
 0x1b1   :  { %v314_v43 = vsub.f32 %v298_v40, %v306_v41  ;;  %v215_v53 = vpop.xlane.xlu2 %214 }
 0x1b2   :  { %v353_v44 = vsub.f32 2.0, %v345_v42  ;;  %v300_v59 = vadd.f32 %v684_v19, %v215_v53 }
 0x1b3   :  { %v322_v45 = vmax.f32 %v314_v43, 0.0 }
 0x1b4   :  { %v692_v47 = vmul.f32 %v509_v39, %v353_v44 }
 0x1b5   :  { %v330_v48 = vadd.f32 1.0, %v322_v45 }
 0x1b6   :  { %v277_v49 = vpop.f32.mrf.mxu2  ;;  %370 = vadd.xlane.f32.xlu0 %v692_v47 }
 0x1b7   :  { %510 = vrcp.f32 %v330_v48  ;;  %v307_v51 = vmul.f32 2.0, %v277_v49 }
 0x1b9   :  { %v315_v52 = vsub.f32 %v299_v50, %v307_v51  ;;  %v218_v1 = vpop.xlane.xlu2 %217 }
 0x1ba   :  { %v301_v6 = vadd.f32 %v684_v19, %v218_v1 }
 0x1bb   :  { %v323_v54 = vmax.f32 %v315_v52, 0.0 }
 0x1bd   :  { %v511_v55 = vpop.eup %510  ;;  %v331_v56 = vadd.f32 1.0, %v323_v54 }
 0x1be   :  { %v280_v57 = vpop.f32.mrf.mxu2  ;;  %v346_v58 = vmul.f32 %v511_v55, %v330_v48 }
 0x1bf   :  { %512 = vrcp.f32 %v331_v56  ;;  %v308_v60 = vmul.f32 2.0, %v280_v57 }
 0x1c0   :  { %v354_v61 = vsub.f32 2.0, %v346_v58 }
 0x1c1   :  { %v316_v62 = vsub.f32 %v300_v59, %v308_v60  ;;  %v221_v12 = vpop.xlane.xlu0 %220 }
 0x1c2   :  { %v697_v63 = vmul.f32 %v511_v55, %v354_v61  ;;  %v302_v17 = vadd.f32 %v684_v19, %v221_v12 }
 0x1c3   :  { %v324_v0 = vmax.f32 %v316_v62, 0.0 }
 0x1c4   :  { %372 = vadd.xlane.f32.xlu1 %v697_v63 }
 0x1c5   :  { %v513_v2 = vpop.eup %512  ;;  %v332_v3 = vadd.f32 1.0, %v324_v0 }
 0x1c6   :  { %v283_v4 = vpop.f32.mrf.mxu2  ;;  %v347_v5 = vmul.f32 %v513_v2, %v331_v56 }
 0x1c7   :  { %514 = vrcp.f32 %v332_v3  ;;  %v309_v7 = vmul.f32 2.0, %v283_v4 }
 0x1c8   :  { %v355_v8 = vsub.f32 2.0, %v347_v5 }
 0x1c9   :  { %v317_v9 = vsub.f32 %v301_v6, %v309_v7  ;;  %v224_v24 = vpop.xlane.xlu1 %223 }
 0x1ca   :  { %v701_v10 = vmul.f32 %v513_v2, %v355_v8  ;;  %v303_v29 = vadd.f32 %v684_v19, %v224_v24 }
 0x1cb   :  { %v325_v11 = vmax.f32 %v317_v9, 0.0 }
 0x1cc   :  { %374 = vadd.xlane.f32.xlu2 %v701_v10 }
 0x1cd   :  { %v515_v13 = vpop.eup %514  ;;  %v333_v14 = vadd.f32 1.0, %v325_v11 }
 0x1ce   :  { %v286_v15 = vpop.f32.mrf.mxu2  ;;  %v348_v16 = vmul.f32 %v515_v13, %v332_v3 }
 0x1cf   :  { %516 = vrcp.f32 %v333_v14  ;;  %v310_v18 = vmul.f32 2.0, %v286_v15 }
 0x1d0   :  { %v356_v20 = vsub.f32 2.0, %v348_v16 }
 0x1d1   :  { %v318_v21 = vsub.f32 %v302_v17, %v310_v18 }
 0x1d2   :  { %v705_v22 = vmul.f32 %v515_v13, %v356_v20 }
 0x1d3   :  { %v326_v23 = vmax.f32 %v318_v21, 0.0 }
 0x1d4   :  { %376 = vadd.xlane.f32.xlu0 %v705_v22 }
 0x1d5   :  { %v517_v25 = vpop.eup %516  ;;  %v334_v26 = vadd.f32 1.0, %v326_v23 }
 0x1d6   :  { %v289_v27 = vpop.f32.mrf.mxu2  ;;  %v349_v28 = vmul.f32 %v517_v25, %v333_v14 }
 0x1d7   :  { %518 = vrcp.f32 %v334_v26  ;;  %v311_v30 = vmul.f32 2.0, %v289_v27 }
 0x1d8   :  { %v357_v31 = vsub.f32 2.0, %v349_v28 }
 0x1d9   :  { %v319_v32 = vsub.f32 %v303_v29, %v311_v30 }
 0x1da   :  { %v709_v33 = vmul.f32 %v517_v25, %v357_v31 }
 0x1db   :  { %v327_v34 = vmax.f32 %v319_v32, 0.0 }
 0x1dc   :  { %378 = vadd.xlane.f32.xlu1 %v709_v33 }
 0x1dd   :  { %v519_v35 = vpop.eup %518  ;;  %v335_v36 = vadd.f32 1.0, %v327_v34 }
 0x1de   :  { %v350_v38 = vmul.f32 %v519_v35, %v334_v26 }
 0x1df   :  { %520 = vrcp.f32 %v335_v36 }
 0x1e0   :  { %v358_v39 = vsub.f32 2.0, %v350_v38 }
 0x1e2   :  { %v712_v40 = vmul.f32 %v519_v35, %v358_v39 }
 0x1e4   :  { %380 = vadd.xlane.f32.xlu2 %v712_v40 }
 0x1e5   :  { %v521_v41 = vpop.eup %520 }
 0x1e6   :  { %v351_v19 = vmul.f32 %v521_v41, %v335_v36 }
 0x1e8   :  { %v359_v42 = vsub.f32 2.0, %v351_v19 }
 0x1ea   :  { %v715_v43 = vmul.f32 %v521_v41, %v359_v42 }
 0x1ec   :  { %382 = vadd.xlane.f32.xlu0 %v715_v43 }
 0x221   :  { %v369_v44 = vpop.xlane.xlu2 %368 }
 0x222   :  { %522 = vrcp.f32 %v369_v44 }
 0x228   :  { %v523_v45 = vpop.eup %522 }
 0x229   :  { %v392_v46 = vmul.f32 %v523_v45, %v369_v44  ;;  %v371_v48 = vpop.xlane.xlu0 %370 }
 0x22a   :  { %524 = vrcp.f32 %v371_v48 }
 0x22b   :  { %v400_v49 = vsub.f32 2.0, %v392_v46 }
 0x22d   :  { %v408_v50 = vmul.f32 %v523_v45, %v400_v49 }
 0x22f   :  { %v416_v51 = vmul.f32 %v408_v50, %v688_v37 }
 0x230   :  { %v525_v52 = vpop.eup %524 }
 0x231   :  { %424 = vst [vmem:[#allocation2] sm:$0xff] %v416_v51  ;;  %v393_v53 = vmul.f32 %v525_v52, %v371_v48 }
 0x233   :  { %v401_v54 = vsub.f32 2.0, %v393_v53 }
 0x235   :  { %v409_v55 = vmul.f32 %v525_v52, %v401_v54 }
 0x237   :  { %v417_v56 = vmul.f32 %v409_v55, %v692_v47  ;;  %v373_v57 = vpop.xlane.xlu1 %372 }
 0x238   :  { %526 = vrcp.f32 %v373_v57 }
 0x239   :  { %425 = vst [vmem:[#allocation2 + $0x8] sm:$0xff] %v417_v56 }
 0x23e   :  { %v527_v58 = vpop.eup %526 }
 0x23f   :  { %v394_v59 = vmul.f32 %v527_v58, %v373_v57  ;;  %v375_v60 = vpop.xlane.xlu2 %374 }
 0x240   :  { %528 = vrcp.f32 %v375_v60 }
 0x241   :  { %v402_v61 = vsub.f32 2.0, %v394_v59 }
 0x243   :  { %v410_v62 = vmul.f32 %v527_v58, %v402_v61 }
 0x245   :  { %v418_v0 = vmul.f32 %v410_v62, %v697_v63 }
 0x246   :  { %v529_v1 = vpop.eup %528 }
 0x247   :  { %426 = vst [vmem:[#allocation2 + $0x10] sm:$0xff] %v418_v0  ;;  %v395_v37 = vmul.f32 %v529_v1, %v375_v60  ;;  %v377_v2 = vpop.xlane.xlu0 %376 }
 0x248   :  { %530 = vrcp.f32 %v377_v2 }
 0x249   :  { %v403_v3 = vsub.f32 2.0, %v395_v37 }
 0x24b   :  { %v411_v4 = vmul.f32 %v529_v1, %v403_v3 }
 0x24d   :  { %v419_v47 = vmul.f32 %v411_v4, %v701_v10 }
 0x24e   :  { %v531_v5 = vpop.eup %530 }
 0x24f   :  { %427 = vst [vmem:[#allocation2 + $0x18] sm:$0xff] %v419_v47  ;;  %v396_v6 = vmul.f32 %v531_v5, %v377_v2  ;;  %v379_v7 = vpop.xlane.xlu1 %378 }
 0x250   :  { %532 = vrcp.f32 %v379_v7 }
 0x251   :  { %v404_v8 = vsub.f32 2.0, %v396_v6 }
 0x253   :  { %v412_v9 = vmul.f32 %v531_v5, %v404_v8 }
 0x255   :  { %v420_v11 = vmul.f32 %v412_v9, %v705_v22 }
 0x256   :  { %v533_v12 = vpop.eup %532 }
 0x257   :  { %428 = vst [vmem:[#allocation2 + $0x20] sm:$0xff] %v420_v11  ;;  %v397_v63 = vmul.f32 %v533_v12, %v379_v7  ;;  %v381_v13 = vpop.xlane.xlu2 %380 }
 0x258   :  { %534 = vrcp.f32 %v381_v13 }
 0x259   :  { %v405_v14 = vsub.f32 2.0, %v397_v63 }
 0x25b   :  { %v413_v15 = vmul.f32 %v533_v12, %v405_v14 }
 0x25d   :  { %v421_v16 = vmul.f32 %v413_v15, %v709_v33 }
 0x25e   :  { %v535_v17 = vpop.eup %534 }
 0x25f   :  { %429 = vst [vmem:[#allocation2 + $0x28] sm:$0xff] %v421_v16  ;;  %v398_v10 = vmul.f32 %v535_v17, %v381_v13  ;;  %v383_v18 = vpop.xlane.xlu0 %382 }
 0x260   :  { %536 = vrcp.f32 %v383_v18 }
 0x261   :  { %v406_v20 = vsub.f32 2.0, %v398_v10 }
 0x263   :  { %v414_v21 = vmul.f32 %v535_v17, %v406_v20 }
 0x265   :  { %v422_v23 = vmul.f32 %v414_v21, %v712_v40 }
 0x266   :  { %v537_v24 = vpop.eup %536 }
 0x267   :  { %430 = vst [vmem:[#allocation2 + $0x30] sm:$0xff] %v422_v23  ;;  %v399_v22 = vmul.f32 %v537_v24, %v383_v18 }
 0x269   :  { %v407_v25 = vsub.f32 2.0, %v399_v22 }
 0x26b   :  { %v415_v26 = vmul.f32 %v537_v24, %v407_v25 }
 0x26d   :  { %v423_v27 = vmul.f32 %v415_v26, %v715_v43 }
 0x26f   :  { %431 = vst [vmem:[#allocation2 + $0x38] sm:$0xff] %v423_v27 }
 0x270   :  { %444 = dma.vmem_to_hbm [thread:$0]  %s437_s10, 1024, %s439_s12, [#allocation3], %s565_s13, %s565_s13, %s566_s14  }
 0x271   :  { %562 = dma.done.wait [#allocation3], 1024  }
 0x272   :  { %563 = vsyncadd [#allocation3], 4294966272 }
 0x273   :  { %449 = vsyncpa [#allocation3], 1 }

</bundles_post_ra>
